<compile_context>
chip_gen: v6e
topology: v6e:2x2x1
jax: 0.10.0
libtpu: 0.0.40
codegen_flags: <defaults>
</compile_context>

<pallas_src>
import jax
import jax.numpy as jnp
from jax.experimental import pallas as pl
from jax.experimental.pallas import tpu as pltpu


def _cond_gcn_kernel(x_ref, ad_ref, wmix_ref, bias_ref, out_ref, z_ref):
    # x_ref   : (Nb*Cin, L)        Nb batch elems stacked on sublanes, L = Tb*V
    # ad_ref  : (K, L, L)          kron(I_Tb, A_k @ E0)
    # wmix_ref: (Nb*C, K*Nb*Cin)   batch-block-diagonal fused (W2 @ W1_k)
    # bias_ref: (Nb*C, L)          folded bias (f32), tiled over Nb and Tb
    # out_ref : (Nb*C, L)
    # z_ref   : (K*Nb*Cin, L)      VMEM scratch: graph-contracted activations
    K = ad_ref.shape[0]
    rows = x_ref.shape[0]
    x = x_ref[...]

    # Graph contraction: K lane-dense MXU matmuls with up to 128 output rows.
    for k in range(K):  # K is small & static -> unrolled MXU pushes
        z_ref[k * rows:(k + 1) * rows, :] = jnp.dot(
            x, ad_ref[k], preferred_element_type=jnp.float32
        ).astype(z_ref.dtype)

    # Channel mix + K-sum fused into ONE MXU contraction of depth K*Nb*Cin.
    acc = jnp.dot(wmix_ref[...], z_ref[...], preferred_element_type=jnp.float32)
    out_ref[...] = (acc + bias_ref[...]).astype(out_ref.dtype)


def _choose_tb(T, V, max_lanes=512):
    """Largest divisor of T with Tb*V <= max_lanes (wide, lane-dense slabs)."""
    best = 1
    for cand in range(1, T + 1):
        if T % cand == 0 and cand * V <= max_lanes:
            best = cand
    return best


def conditional_conv_temporal_graphical(x, A, w1, b1, w2, b2, E, *,
                                        nb=None, tb=None,
                                        compute_dtype=jnp.float32):
    """x: (N, Cin, T, V); A: (K, V, V); w1: (K*C, Cin) 1x1-conv weight;
    b1: (K*C,); w2: (C, C); b2: (C,); E: (1, V, V).  Returns (out, A)."""
    N, Cin, T, V = x.shape
    K, Va, Vw = A.shape
    # Guards: only the default module config (1x1 temporal conv, Cin == Cout).
    assert Va == V and Vw == V, "A must be (K, V, V)"
    assert w1.ndim == 2, "only the default 1x1 temporal conv is supported"
    KC, Cin_w = w1.shape
    assert Cin_w == Cin and KC % K == 0
    C = KC // K
    assert C == Cin, "forward only well-defined when in_channels == out_channels"
    assert w2.shape == (C, C) and b1.shape == (KC,) and b2.shape == (C,)
    assert E.shape == (1, V, V)

    f32 = jnp.float32
    cdt = compute_dtype

    # ---- tiling choices ----
    if tb is None:
        tb = _choose_tb(T, V)
    assert T % tb == 0
    n_tb = T // tb
    L = tb * V                       # lanes per block
    if nb is None:
        nb = min(N, 8)               # 8-16 batch elements per grid step
    n_pad = (-N) % nb
    Np = N + n_pad
    assert (nb * Cin) % 8 == 0 and (nb * C) % 8 == 0, \
        "nb*channels must be a multiple of 8 (sublane tiling)"

    # ---- host-side constant folding, in f32, cast once at the end ----
    w2f, e0 = w2.astype(f32), E[0].astype(f32)
    w1p = jnp.einsum('oc,kci->koi', w2f, w1.astype(f32).reshape(K, C, Cin),
                     precision='highest')                            # (K, C, Cin)
    ap = jnp.einsum('kvw,wu->kvu', A.astype(f32), e0,
                    precision='highest')                             # (K, V, V)
    wb1 = jnp.einsum('oc,kc->ko', w2f, b1.astype(f32).reshape(K, C),
                     precision='highest')                            # (K, C)
    bias_cv = (jnp.einsum('ko,ku->ou', wb1, ap.sum(axis=1), precision='highest')
               + b2.astype(f32)[:, None] * e0.sum(axis=0)[None, :])  # (C, V)

    # kron(I_Tb, Ap_k): block-diagonal over the Tb frames of ONE T-block only.
    ad = (jnp.eye(tb, dtype=f32)[None, :, None, :, None]
          * ap[:, None, :, None, :]).reshape(K, L, L).astype(cdt)    # (K, L, L)

    # Batch-block-diagonal channel-mix weight: out = wmix @ z (K-sum in MXU).
    wmix = (jnp.eye(nb, dtype=f32)[:, None, None, :, None]
            * jnp.transpose(w1p, (1, 0, 2))[None, :, :, None, :]
            ).reshape(nb * C, K * nb * Cin).astype(cdt)              # (Nb*C, K*Nb*Cin)

    bias_blk = jnp.tile(jnp.tile(bias_cv, (1, tb)), (nb, 1))         # (Nb*C, L) f32

    # ---- layout: rows = (n, cin), lanes = (t-in-block, v), grid = (n-blk, t-blk)
    xp = x.astype(cdt)
    if n_pad:
        xp = jnp.pad(xp, ((0, n_pad), (0, 0), (0, 0), (0, 0)))
    x_r = jnp.transpose(xp.reshape(Np, Cin, n_tb, tb, V),
                        (2, 0, 1, 3, 4)).reshape(n_tb, Np * Cin, L)

    out_r = pl.pallas_call(
        _cond_gcn_kernel,
        out_shape=jax.ShapeDtypeStruct((n_tb, Np * C, L), x.dtype),
        grid_spec=pltpu.PrefetchScalarGridSpec(
            num_scalar_prefetch=0,
            grid=(Np // nb, n_tb),
            in_specs=[
                pl.BlockSpec((None, nb * Cin, L), lambda bi, ti: (ti, bi, 0)),
                pl.BlockSpec((K, L, L), lambda bi, ti: (0, 0, 0)),
                pl.BlockSpec((nb * C, K * nb * Cin), lambda bi, ti: (0, 0)),
                pl.BlockSpec((nb * C, L), lambda bi, ti: (0, 0)),
            ],
            out_specs=pl.BlockSpec((None, nb * C, L), lambda bi, ti: (ti, bi, 0)),
            scratch_shapes=[pltpu.VMEM((K * nb * Cin, L), cdt)],
        ),
        compiler_params=pltpu.CompilerParams(
            dimension_semantics=("parallel", "parallel")),
    )(x_r, ad, wmix, bias_blk)

    out = jnp.transpose(out_r.reshape(n_tb, Np, C, tb, V),
                        (1, 2, 0, 3, 4)).reshape(Np, C, T, V)[:N]
    return out, A


def _reference(x, A, w1, b1, w2, b2, E):
    """Pure-JAX reproduction of the PyTorch forward (for validation)."""
    N, Cin, T, V = x.shape
    K = A.shape[0]
    KC = w1.shape[0]
    C = KC // K
    y1 = jnp.einsum('oc,nctv->notv', w1, x, precision='highest') \
        + b1[None, :, None, None]
    y1 = y1.reshape(N, K, C, T, V)
    z = jnp.einsum('nkctv,kvw->nctw', y1, A, precision='highest')
    y2 = jnp.einsum('oc,nctv->notv', w2, z, precision='highest') \
        + b2[None, :, None, None]
    out = jnp.einsum('nctv,vw->nctw', y2, E[0], precision='highest')
    return out


if __name__ == "__main__":
    # Small shapes consistent with the module:
    #   N=16 batch, Cin=Cout=8 channels, T=16 frames, V=16 graph nodes,
    #   K=3 adjacency partitions.
    N, C, T, V, K = 16, 8, 16, 16, 3

    key = jax.random.PRNGKey(0)
    k_x, k_a, k_w1, k_b1, k_w2, k_b2, k_e = jax.random.split(key, 7)

    x = jax.random.normal(k_x, (N, C, T, V), dtype=jnp.float32)
    A = jax.random.normal(k_a, (K, V, V), dtype=jnp.float32) * 0.1
    # conv: Conv2d(C, C*K, kernel=(1,1)) -> weight (K*C, C), bias (K*C,)
    w1 = jax.random.normal(k_w1, (K * C, C), dtype=jnp.float32) * 0.1
    b1 = jax.random.normal(k_b1, (K * C,), dtype=jnp.float32) * 0.1
    # cond_gcn.conv: Conv2d(C, C, kernel=(1,1)) -> weight (C, C), bias (C,)
    w2 = jax.random.normal(k_w2, (C, C), dtype=jnp.float32) * 0.1
    b2 = jax.random.normal(k_b2, (C,), dtype=jnp.float32) * 0.1
    # E: Parameter(1, num_node, num_node)
    E = jax.random.normal(k_e, (1, V, V), dtype=jnp.float32) * 0.1

    ref = jax.block_until_ready(_reference(x, A, w1, b1, w2, b2, E))

    # f32 operand path: tight tolerance; explicit (nb=8, tb=8) -> 2x2 grid.
    out_f32, A_ret = conditional_conv_temporal_graphical(
        x, A, w1, b1, w2, b2, E, nb=8, tb=8, compute_dtype=jnp.float32)
    out_f32 = jax.block_until_ready(out_f32)
    assert out_f32.shape == (N, C, T, V)
    assert A_ret.shape == A.shape
    if not jnp.allclose(out_f32, ref, rtol=1e-3, atol=1e-3):
        raise AssertionError("f32 Pallas kernel output does not match reference")

    # bf16 operand path (f32 MXU accumulation), auto tiling: perf configuration.
    out_bf16, _ = conditional_conv_temporal_graphical(
        x, A, w1, b1, w2, b2, E, compute_dtype=jnp.bfloat16)
    out_bf16 = jax.block_until_ready(out_bf16)
    if not jnp.allclose(out_bf16, ref, rtol=2e-2, atol=2e-2):
        raise AssertionError("bf16 Pallas kernel output does not match reference")

    print("KERNEL_OK")
</pallas_src>

<mosaic_0001>
module attributes {stable_mosaic.version = 11 : i64} {
  func.func @_cond_gcn_kernel(%arg0: i32, %arg1: i32, %arg2: memref<1x64x128xf32, #tpu.memory_space<vmem>>, %arg3: memref<3x128x128xf32, #tpu.memory_space<vmem>>, %arg4: memref<64x192xf32, #tpu.memory_space<vmem>>, %arg5: memref<64x128xf32, #tpu.memory_space<vmem>>, %arg6: memref<1x64x128xf32, #tpu.memory_space<vmem>>, %arg7: memref<192x128xf32, #tpu.memory_space<vmem>>) attributes {dimension_semantics = [#tpu.dimension_semantics<parallel>, #tpu.dimension_semantics<parallel>], iteration_bounds = array<i64: 2, 2>, scalar_prefetch = 0 : i64, scratch_operands = 1 : i64, tpu.core_type = #tpu.core_type<tc>, window_params = [{transform_indices = @transform_0, window_bounds = array<i64: 1, 64, 128>}, {pipeline_mode = #tpu.pipeline_mode<synchronous>, transform_indices = @transform_1, window_bounds = array<i64: 3, 128, 128>}, {pipeline_mode = #tpu.pipeline_mode<synchronous>, transform_indices = @transform_2, window_bounds = array<i64: 64, 192>}, {pipeline_mode = #tpu.pipeline_mode<synchronous>, transform_indices = @transform_3, window_bounds = array<i64: 64, 128>}, {transform_indices = @transform_4, window_bounds = array<i64: 1, 64, 128>}]} {
    %c0 = arith.constant 0 : index
    %c0_0 = arith.constant 0 : index
    %c0_1 = arith.constant 0 : index
    %0 = vector.load %arg2[%c0, %c0_0, %c0_1] : memref<1x64x128xf32, #tpu.memory_space<vmem>>, vector<1x64x128xf32>
    %1 = vector.shape_cast %0 : vector<1x64x128xf32> to vector<64x128xf32>
    %c0_2 = arith.constant 0 : index
    %c0_3 = arith.constant 0 : index
    %c0_4 = arith.constant 0 : index
    %2 = vector.load %arg3[%c0_2, %c0_3, %c0_4] : memref<3x128x128xf32, #tpu.memory_space<vmem>>, vector<1x128x128xf32>
    %3 = vector.shape_cast %2 : vector<1x128x128xf32> to vector<128x128xf32>
    %cst = arith.constant dense<0.000000e+00> : vector<64x128xf32>
    %4 = tpu.matmul %1, %3, %cst {dimension_numbers = #tpu.dot_dimension_numbers<[1], [0], [0], [1], [0, 0, 1, 1], [], []>} : vector<64x128xf32>, vector<128x128xf32>, vector<64x128xf32> -> vector<64x128xf32>
    %c0_5 = arith.constant 0 : index
    %c0_6 = arith.constant 0 : index
    %5 = vector.load %arg7[%c0_5, %c0_6] : memref<192x128xf32, #tpu.memory_space<vmem>>, vector<64x128xf32>
    tpu.vector_store %arg7[%c0_5, %c0_6], %4 {strides = array<i32>} : memref<192x128xf32, #tpu.memory_space<vmem>>, vector<64x128xf32>,
    %c1 = arith.constant 1 : index
    %c0_7 = arith.constant 0 : index
    %c0_8 = arith.constant 0 : index
    %6 = vector.load %arg3[%c1, %c0_7, %c0_8] : memref<3x128x128xf32, #tpu.memory_space<vmem>>, vector<1x128x128xf32>
    %7 = vector.shape_cast %6 : vector<1x128x128xf32> to vector<128x128xf32>
    %cst_9 = arith.constant dense<0.000000e+00> : vector<64x128xf32>
    %8 = tpu.matmul %1, %7, %cst_9 {dimension_numbers = #tpu.dot_dimension_numbers<[1], [0], [0], [1], [0, 0, 1, 1], [], []>} : vector<64x128xf32>, vector<128x128xf32>, vector<64x128xf32> -> vector<64x128xf32>
    %c64 = arith.constant 64 : index
    %c0_10 = arith.constant 0 : index
    %9 = vector.load %arg7[%c64, %c0_10] : memref<192x128xf32, #tpu.memory_space<vmem>>, vector<64x128xf32>
    tpu.vector_store %arg7[%c64, %c0_10], %8 {strides = array<i32>} : memref<192x128xf32, #tpu.memory_space<vmem>>, vector<64x128xf32>,
    %c2 = arith.constant 2 : index
    %c0_11 = arith.constant 0 : index
    %c0_12 = arith.constant 0 : index
    %10 = vector.load %arg3[%c2, %c0_11, %c0_12] : memref<3x128x128xf32, #tpu.memory_space<vmem>>, vector<1x128x128xf32>
    %11 = vector.shape_cast %10 : vector<1x128x128xf32> to vector<128x128xf32>
    %cst_13 = arith.constant dense<0.000000e+00> : vector<64x128xf32>
    %12 = tpu.matmul %1, %11, %cst_13 {dimension_numbers = #tpu.dot_dimension_numbers<[1], [0], [0], [1], [0, 0, 1, 1], [], []>} : vector<64x128xf32>, vector<128x128xf32>, vector<64x128xf32> -> vector<64x128xf32>
    %c128 = arith.constant 128 : index
    %c0_14 = arith.constant 0 : index
    %13 = vector.load %arg7[%c128, %c0_14] : memref<192x128xf32, #tpu.memory_space<vmem>>, vector<64x128xf32>
    tpu.vector_store %arg7[%c128, %c0_14], %12 {strides = array<i32>} : memref<192x128xf32, #tpu.memory_space<vmem>>, vector<64x128xf32>,
    %c0_15 = arith.constant 0 : index
    %c0_16 = arith.constant 0 : index
    %14 = vector.load %arg4[%c0_15, %c0_16] : memref<64x192xf32, #tpu.memory_space<vmem>>, vector<64x192xf32>
    %c0_17 = arith.constant 0 : index
    %c0_18 = arith.constant 0 : index
    %15 = vector.load %arg7[%c0_17, %c0_18] : memref<192x128xf32, #tpu.memory_space<vmem>>, vector<192x128xf32>
    %cst_19 = arith.constant dense<0.000000e+00> : vector<64x128xf32>
    %16 = tpu.matmul %14, %15, %cst_19 {dimension_numbers = #tpu.dot_dimension_numbers<[1], [0], [0], [1], [0, 0, 1, 1], [], []>} : vector<64x192xf32>, vector<192x128xf32>, vector<64x128xf32> -> vector<64x128xf32>
    %c0_20 = arith.constant 0 : index
    %c0_21 = arith.constant 0 : index
    %17 = vector.load %arg5[%c0_20, %c0_21] : memref<64x128xf32, #tpu.memory_space<vmem>>, vector<64x128xf32>
    %18 = arith.addf %16, %17 : vector<64x128xf32>
    %c0_22 = arith.constant 0 : index
    %c0_23 = arith.constant 0 : index
    %c0_24 = arith.constant 0 : index
    %19 = vector.load %arg6[%c0_22, %c0_23, %c0_24] : memref<1x64x128xf32, #tpu.memory_space<vmem>>, vector<1x64x128xf32>
    %20 = vector.shape_cast %19 : vector<1x64x128xf32> to vector<64x128xf32>
    %21 = vector.shape_cast %18 : vector<64x128xf32> to vector<1x64x128xf32>
    tpu.vector_store %arg6[%c0_22, %c0_23, %c0_24], %21 {strides = array<i32>} : memref<1x64x128xf32, #tpu.memory_space<vmem>>, vector<1x64x128xf32>,
    return
  }
  func.func @transform_0(%arg0: i32, %arg1: i32) -> (i32, i32, i32) {
    %c0_i32 = arith.constant 0 : i32
    %c0_i32_0 = arith.constant 0 : i32
    return %arg1, %arg0, %c0_i32 : i32, i32, i32
  }
  func.func @transform_1(%arg0: i32, %arg1: i32) -> (i32, i32, i32) {
    %c0_i32 = arith.constant 0 : i32
    %c0_i32_0 = arith.constant 0 : i32
    %c0_i32_1 = arith.constant 0 : i32
    %c0_i32_2 = arith.constant 0 : i32
    return %c0_i32, %c0_i32_0, %c0_i32_1 : i32, i32, i32
  }
  func.func @transform_2(%arg0: i32, %arg1: i32) -> (i32, i32) {
    %c0_i32 = arith.constant 0 : i32
    %c0_i32_0 = arith.constant 0 : i32
    %c0_i32_1 = arith.constant 0 : i32
    return %c0_i32, %c0_i32_0 : i32, i32
  }
  func.func @transform_3(%arg0: i32, %arg1: i32) -> (i32, i32) {
    %c0_i32 = arith.constant 0 : i32
    %c0_i32_0 = arith.constant 0 : i32
    %c0_i32_1 = arith.constant 0 : i32
    return %c0_i32, %c0_i32_0 : i32, i32
  }
  func.func @transform_4(%arg0: i32, %arg1: i32) -> (i32, i32, i32) {
    %c0_i32 = arith.constant 0 : i32
    %c0_i32_0 = arith.constant 0 : i32
    return %arg1, %arg0, %c0_i32 : i32, i32, i32
  }
}

</mosaic_0001>

<bundles_post_ra>
// kernel: tpu_custom_call.1
= control target key start
LH: loop header
LB: loop body
LE: loop exit
PB: predicated region body
PF: predicated region fallthrough
CT: control target
= control target key end

     0   :  { %s1907_s0 = inlined_call_operand.hbm [shape: f32[2,128,128], index: 0, kind: input, shape index: {}]   ;;  %s1908_s1 = inlined_call_operand.hbm [shape: f32[3,128,128], index: 1, kind: input, shape index: {}]   ;;  %s1909_s2 = inlined_call_operand.hbm [shape: f32[64,192], index: 2, kind: input, shape index: {}]   ;;  %s1910_s3 = inlined_call_operand.hbm [shape: f32[64,128], index: 3, kind: input, shape index: {}]   ;;  %s1911_s4 = inlined_call_operand.hbm [shape: f32[2,128,128], index: 4, kind: output, shape index: {}]  }
   0x1   :  { %1917 = sst [smem:[#allocation19_spill]] %s1908_s1 }
   0x2   :  { %1918 = sst [smem:[#allocation20_spill]] %s1909_s2 }
   0x3   :  { %1919 = sst [smem:[#allocation21_spill]] %s1910_s3 }
   0x4   :  { %9 = vsyncpa [#allocation4], 0 }
   0x5   :  { %11 = vsyncpa [#allocation4 + $0x1], 0 }
   0x6   :  { %12 = vsyncpa [#allocation7], 0 }
   0x7   :  { %13 = vsyncpa [#allocation10], 0 }
   0x8   :  { %14 = vsyncpa [#allocation5], 0 }
   0x9   :  { %16 = vsyncpa [#allocation5 + $0x1], 0  ;;  %s1598_s15 = smov 0   ;;  %s1600_s16 = smov 0  }
   0xa   :  { %s1602_s17 = smov 0   ;;  %s1604_s18 = smov 0  }
   0xb   :  { %s1606_s19 = smov 0   ;;  %s1608_s20 = smov 0  }
   0xc   :  { %s1610_s21 = smov 0   ;;  %s1612_s22 = smov 0  }
   0xd LB: > { %1920 = sst [smem:[#allocation16_spill]] %s1531_s15  ;;  %s998_s23 = sadd.s32 4294967295, %s1559_s22   ;;  %s1559_s22 = sphi %s1612_s22, %s22_s22   ;;  %s1555_s21 = sphi %s1610_s21, %s1946_s21   ;;  %s1551_s20 = sphi %s1608_s20, %s1945_s20   ;;  %s1547_s19 = sphi %s1606_s19, %s1944_s19   ;;  %s1543_s18 = sphi %s1604_s18, %s1943_s18   ;;  %s1539_s17 = sphi %s1602_s17, %s1942_s17   ;;  %s1535_s16 = sphi %s1600_s16, %s1941_s16   ;;  %s1531_s15 = sphi %s1598_s15, %s1940_s15  }
   0xe   : > { %s999_s24 = sadd.s32 4294967294, %s1559_s22   ;;  %p56_p0 = scmp.ne.s32.totalorder %s1535_s16, %s1531_s15 }
   0xf   : > { %p1642_p1 = scmp.eq.s32.totalorder %s998_s23, 0  ;;  %p1646_p2 = scmp.eq.s32.totalorder %s998_s23, 3 }
  0x10   : > { %p151_p3 = scmp.eq.s32.totalorder %s999_s24, 3  ;;  %p1000_p5 = scmp.ge.s32.totalorder %s1559_s22, 1 }
  0x11   : > { %p1652_p4 = por %p1642_p1, %p56_p0  ;;  %p158_p7 = scmp.lt.s32.totalorder %s1559_s22, 5 }
  0x12   : > { %p1657_p6 = por %p151_p3, %p56_p0  ;;  %s1561_s30 = smov [#allocation6]  }
  0x13   : > { %p1662_p8 = pnand %p1000_p5, %p158_p7  ;;  %s170_s5 = sshll.u32 %s1561_s30, 4  ;;  %s171_s5 = int_to_ptr.vmem [resolvable:$true] %s170_s5 }
  0x14   : > { %s1924_s28 = scalar_select %p1657_p6, 1, 0 }
  0x15   : > { %p1249_p9 = pneg %p1662_p8  ;;  %s1562_s7 = smov [#allocation8]  }
  0x16   : > { %1925 = sst [smem:[#allocation17_spill]] %s1924_s28  ;;  %s183_s8 = sshll.u32 %s1562_s7, 4  ;;  %s184_s8 = int_to_ptr.vmem [resolvable:$true] %s183_s8 }
  0x17   : > { %p1670_p10 = pnand %p1249_p9, %p1642_p1  ;;  %s1360_s9 = scalar_lea.vmem %s171_s5, 6144 }
  0x18   : > { %p1361_p12 = scmp.ne.s32.totalorder %s171_s5, %s1360_s9  ;;  %p1368_p3 = scmp.lt.s32.totalorder %s171_s5, %s171_s5 }
  0x19   : > { %p1351_p11 = pneg %p1670_p10  ;;  %p1369_p5 = scmp.lt.s32.totalorder %s1360_s9, %s1360_s9 }
  0x1b   : > { %p1363_p13 = pnand %p1361_p12, %p1351_p11  ;;  %p1370_p7 = por %p1369_p5, %p1368_p3 }
  0x1d   : > { %p1364_p0 = pneg %p1363_p13 }
  0x1f   : > { %p1371_p9 = pnand %p1370_p7, %p1364_p0 }
  0x21   : > { %1374 = shalt.err (!%p1371_p9)
}
  0x22   : > { %s1912_s10 = smov 128   ;;  %s1913_s11 = smov 8  }
  0x23   : > { %s1928_s1 = sld [smem:[#allocation19_spill]]  ;;  %s1386_s14 = scalar_lea.vmem %s184_s8, 2048 }
  0x24   : > { %p1387_p12 = scmp.ne.s32.totalorder %s184_s8, %s1386_s14  ;;  %p1394_p0 = scmp.lt.s32.totalorder %s184_s8, %s184_s8 }
  0x25   : > { %p1395_p5 = scmp.lt.s32.totalorder %s1386_s14, %s1386_s14 }
  0x26   : > { %p1389_p13 = pnand %p1387_p12, %p1351_p11 }
  0x27   : > { %p1396_p7 = por %p1395_p5, %p1394_p0 }
  0x28   : > { %p1390_p3 = pneg %p1389_p13 }
  0x29   : > { %1252 = dma.hbm_to_vmem [thread:$0]  (!%p1670_p10), %s1928_s1, 6144, %s171_s5, [#allocation7], %s1912_s10, %s1912_s10, %s1913_s11  }
  0x2a   : > { %p1397_p9 = pnand %p1396_p7, %p1390_p3 }
  0x2c   : > { %1400 = shalt.err (!%p1397_p9)
}
  0x2d   : > { %s1565_s23 = smov 256   ;;  %s1566_s24 = smov 16  }
  0x2e   : > { %s1929_s2 = sld [smem:[#allocation20_spill]]  ;;  %s1567_s5 = smov [#allocation9]  }
  0x2f   : > { %s196_s9 = sshll.u32 %s1567_s5, 4  ;;  %s197_s9 = int_to_ptr.vmem [resolvable:$true] %s196_s9 }
  0x30   : > { %s1412_s12 = scalar_lea.vmem %s197_s9, 1024  ;;  %p1420_p3 = scmp.lt.s32.totalorder %s197_s9, %s197_s9 }
  0x31   : > { %p1413_p12 = scmp.ne.s32.totalorder %s197_s9, %s1412_s12  ;;  %p1421_p5 = scmp.lt.s32.totalorder %s1412_s12, %s1412_s12 }
  0x33   : > { %p1415_p13 = pnand %p1413_p12, %p1351_p11  ;;  %p1422_p7 = por %p1421_p5, %p1420_p3 }
  0x34   : > { %1255 = dma.hbm_to_vmem [thread:$0]  (!%p1670_p10), %s1929_s2, 2048, %s184_s8, [#allocation7], %s1565_s23, %s1565_s23, %s1566_s24  }
  0x35   : > { %p1416_p0 = pneg %p1415_p13 }
  0x37   : > { %p1423_p9 = pnand %p1422_p7, %p1416_p0 }
  0x39   : > { %1426 = shalt.err (!%p1423_p9)
}
  0x3a   : > { %s1930_s3 = sld [smem:[#allocation21_spill]]  ;;  %s31_s6 = sadd.s32 1, %s1551_s20 }
  0x3b   : > { %p32_p11 = scmp.ge.s32.totalorder %s31_s6, 2  ;;  %s34_s14 = sadd.s32 1, %s1555_s21 }
  0x3c   : > { %s43_s23 = sadd.s32 1, %s1539_s17  ;;  %p50_p12 = scmp.ne.s32.totalorder %s1539_s17, %s1535_s16 }
  0x3d   : > { %s1948_s6 = smov (%p32_p11, %s31_s6), 0  ;;  %s1950_s14 = smov (!%p32_p11, %s34_s14), %s1555_s21 }
  0x3e   : > { %1931 = sst [smem:[#allocation18_spill]] %s1948_s6  ;;  %s38_s24 = ssub.s32 %s1551_s20, %s1948_s6 }
  0x3f   : > { %p51_p13 = scmp.eq.s32.totalorder %s1559_s22, 0  ;;  %p36_p0 = scmp.ge.s32.totalorder %s1950_s14, 2 }
  0x40   : > { %1258 = dma.hbm_to_vmem [thread:$0]  (!%p1670_p10), %s1930_s3, 1024, %s197_s9, [#allocation10], %s1912_s10, %s1912_s10, %s1913_s11  }
  0x41   : > { %p1719_p3 = por %p1646_p2, %p50_p12  ;;  %p1723_p10 = por %p51_p13, %p50_p12 }
  0x42   : > { %p1270_p5 = scmp.lt.s32.totalorder %s1559_s22, 4  ;;  %s1952_s14 = smov (%p36_p0, %s1950_s14), 0 }
  0x43   : > { %s210_s5 = sand.u32 1, %s1539_s17   ;;  %s1006_s9 = sshll.u32 %s1555_s21, 3 }
  0x44   : > { %s39_s12 = ssub.s32 %s1555_s21, %s1952_s14  ;;  %s1005_s13 = sshll.u32 %s210_s5, 6 }
  0x45   : > { %s40_s8 = sor.u32 %s39_s12, %s38_s24  ;;  %s1007_s26 = sshll.u32 %s1551_s20, 4 }
  0x46   : > { %p41_p7 = scmp.eq.s32.totalorder %s40_s8, 0  ;;  %s214_s10 = scalar_lea.vmem [#allocation3], %s1005_s13 }
  0x47   : > { %s223_s11 = sshll.u32 %s214_s10, 4  ;;  %s220_s2 = sadd.s32 %s1007_s26, %s1006_s9  ;;  %s224_s11 = int_to_ptr.vmem [resolvable:$true] %s223_s11 }
  0x48   : > { %s1736_s1 = scalar_select %p41_p7, %s1539_s17, %s43_s23  }
  0x49   : > { %s1008_s3 = sshll.u32 %s220_s2, 7  ;;  %p1742_p2 = pnand %p1270_p5, %p1723_p10 }
  0x4a   : > { %s222_s24 = scalar_lea.hbm %s1907_s0, %s1008_s3  ;;  %s211_s12 = scalar_lea.sflag [#allocation4], %s210_s5 }
  0x4b   : > { %p1429_p9 = pneg %p1742_p2  ;;  %s1440_s10 = scalar_lea.vmem %s224_s11, 1024 }
  0x4c   : > { %p1441_p11 = scmp.ne.s32.totalorder %s224_s11, %s1440_s10  ;;  %s1568_s23 = smov [#allocation3]  }
  0x4d   : > { %s1445_s2 = sshll.u32 %s1568_s23, 4  ;;  %s1446_s2 = int_to_ptr.vmem [resolvable:$false] %s1445_s2 }
  0x4e   : > { %p1443_p12 = pnand %p1441_p11, %p1429_p9  ;;  %s1447_s7 = scalar_lea.vmem %s1446_s2, 2048 }
  0x4f   : > { %p1448_p0 = scmp.lt.s32.totalorder %s224_s11, %s1446_s2  ;;  %p1449_p10 = scmp.lt.s32.totalorder %s1447_s7, %s1440_s10 }
  0x50   : > { %p1444_p13 = pneg %p1443_p12 }
  0x51   : > { %p1450_p5 = por %p1449_p10, %p1448_p0 }
  0x53   : > { %p1451_p7 = pnand %p1450_p5, %p1444_p13 }
  0x55   : > { %1454 = shalt.err (!%p1451_p7)
}
  0x56   : > { %s1935_s15 = smov 8   ;;  %s1936_s3 = smov 128  }
  0x57   : > { %1262 = dma.hbm_to_vmem [thread:$0]  (!%p1742_p2), %s222_s24, 1024, %s224_s11, %s211_s12, %s1936_s3, %s1936_s3, %s1935_s15  }
  0x58   : > { %235 = sbr.rel (%p1662_p8) target bundleno = 622 (0x26e), region = 36  ;;  %s1759_s28 = sand.u32 (!%p1662_p8), 1, %s1535_s16  }
  0x59   : > { %s1010_s5 = sshll.u32 (!%p1662_p8), %s1759_s28, 6  ;;  %s238_s9 = scalar_lea.sflag (!%p1662_p8), [#allocation4], %s1759_s28 }
  0x5a   : > { %s1765_s8 = scalar_lea.vmem (!%p1662_p8), [#allocation3], %s1010_s5 }
  0x5d   : > { %1514 = dma.done.wait (%p1652_p4), %s238_s9, 1024  }
  0x5e   : > { %1516 = vsyncadd (%p1652_p4), %s238_s9, 4294966272 }
  0x5f   : > { %1518 = dma.done.wait (%p1642_p1), [#allocation7], 8192  }
  0x60   : > { %1520 = vsyncadd (%p1642_p1), [#allocation7], 4294959104 }
  0x61   : > { %1522 = dma.done.wait (%p1642_p1), [#allocation10], 1024  }
  0x62   : > { %1524 = vsyncadd (%p1642_p1), [#allocation10], 4294966272  ;;  %v303_v0 = vld [vmem:[#allocation6 + $0x78] sm:$0xff]  ;;  %v302_v2 = vld [vmem:[#allocation6 + $0x70] sm:$0xff]  ;;  %v1569_v56 = vmov 0.0   ;;  %vm725_vm0 = vcmask 523264  }
  0x63   : > { %v433_v1 = vld [vmem:[#allocation6 + $0xf8] sm:$0xff]  ;;  %1101 = vmatprep.subr.mxu0 %v303_v0  ;;  %v432_v3 = vld [vmem:[#allocation6 + $0xf0] sm:$0xff]  ;;  %v301_v4 = vld [vmem:[#allocation6 + $0x68] sm:$0xff]  ;;  %s1836_s25 = scalar_lea.vmem [#allocation11], %s1010_s5  ;;  %s1024_s27 = sshll.u32 %s1547_s19, 3 }
  0x64   : > { %1145 = vmatprep.subr.mxu1 %v433_v1  ;;  %1102 = vmatpush3.msra.mxu0 %v303_v0  ;;  %v431_v5 = vld [vmem:[#allocation6 + $0xe8] sm:$0xff]  ;;  %v300_v6 = vld [vmem:[#allocation6 + $0x60] sm:$0xff]  ;;  %v299_v8 = vld [vmem:[#allocation6 + $0x58] sm:$0xff]  ;;  %s1025_s29 = sshll.u32 %s1543_s18, 4  ;;  %s879_s6 = sshll.u32 %s1836_s25, 4  ;;  %s1847_s6 = int_to_ptr.vmem [resolvable:$true] %s879_s6 }
  0x65   : > { %1146 = vmatpush3.msra.mxu1 %v433_v1  ;;  %1103 = vmatprep.subr.mxu0 %v302_v2  ;;  %v430_v7 = vld [vmem:[#allocation6 + $0xe0] sm:$0xff]  ;;  %v429_v9 = vld [vmem:[#allocation6 + $0xd8] sm:$0xff]  ;;  %v298_v10 = vld [vmem:[#allocation6 + $0x50] sm:$0xff]  ;;  %s876_s11 = sadd.s32 %s1025_s29, %s1024_s27  ;;  %s864_s24 = scalar_lea.sflag [#allocation5], %s1759_s28 }
  0x66   : > { %1147 = vmatprep.subr.mxu1 %v432_v3  ;;  %1104 = vmatpush3.msra.mxu0 %v302_v2  ;;  %v428_v11 = vld [vmem:[#allocation6 + $0xd0] sm:$0xff]  ;;  %v297_v12 = vld [vmem:[#allocation6 + $0x48] sm:$0xff]  ;;  %v296_v14 = vld [vmem:[#allocation6 + $0x40] sm:$0xff]  ;;  %s1026_s13 = sshll.u32 %s876_s11, 7  ;;  %s1455_s12 = scalar_lea.vmem %s1847_s6, 1024 }
  0x67   : > { %1148 = vmatpush3.msra.mxu1 %v432_v3  ;;  %1105 = vmatprep.subr.mxu0 %v301_v4  ;;  %v427_v13 = vld [vmem:[#allocation6 + $0xc8] sm:$0xff]  ;;  %v426_v15 = vld [vmem:[#allocation6 + $0xc0] sm:$0xff]  ;;  %v295_v16 = vld [vmem:[#allocation6 + $0x38] sm:$0xff]  ;;  %s1853_s26 = scalar_lea.hbm %s1911_s4, %s1026_s13  ;;  %p1456_p1 = scmp.ne.s32.totalorder %s1847_s6, %s1455_s12 }
  0x68   : > { %1149 = vmatprep.subr.mxu1 %v431_v5  ;;  %1106 = vmatpush3.msra.mxu0 %v301_v4  ;;  %v425_v17 = vld [vmem:[#allocation6 + $0xb8] sm:$0xff]  ;;  %v294_v18 = vld [vmem:[#allocation6 + $0x30] sm:$0xff]  ;;  %v293_v20 = vld [vmem:[#allocation6 + $0x28] sm:$0xff]  ;;  %s1570_s10 = smov [#allocation11]  }
  0x69   : > { %1150 = vmatpush3.msra.mxu1 %v431_v5  ;;  %1107 = vmatprep.subr.mxu0 %v300_v6  ;;  %v424_v19 = vld [vmem:[#allocation6 + $0xb0] sm:$0xff]  ;;  %v423_v21 = vld [vmem:[#allocation6 + $0xa8] sm:$0xff]  ;;  %v292_v22 = vld [vmem:[#allocation6 + $0x20] sm:$0xff]  ;;  %p1457_p4 = pnand %p1456_p1, %p1719_p3  ;;  %s1459_s23 = sshll.u32 %s1570_s10, 4  ;;  %s1460_s23 = int_to_ptr.vmem [resolvable:$false] %s1459_s23 }
  0x6a   : > { %1151 = vmatprep.subr.mxu1 %v430_v7  ;;  %1108 = vmatpush3.msra.mxu0 %v300_v6  ;;  %v422_v23 = vld [vmem:[#allocation6 + $0xa0] sm:$0xff]  ;;  %v291_v24 = vld [vmem:[#allocation6 + $0x18] sm:$0xff]  ;;  %v290_v26 = vld [vmem:[#allocation6 + $0x10] sm:$0xff]  ;;  %s1461_s2 = scalar_lea.vmem %s1460_s23, 2048  ;;  %p1462_p2 = scmp.lt.s32.totalorder %s1847_s6, %s1460_s23 }
  0x6b   : > { %1152 = vmatpush3.msra.mxu1 %v430_v7  ;;  %1109 = vmatprep.subr.mxu0 %v299_v8  ;;  %v421_v25 = vld [vmem:[#allocation6 + $0x98] sm:$0xff]  ;;  %v420_v27 = vld [vmem:[#allocation6 + $0x90] sm:$0xff]  ;;  %v289_v28 = vld [vmem:[#allocation6 + $0x8] sm:$0xff]  ;;  %p1458_p8 = pneg %p1457_p4  ;;  %p1463_p9 = scmp.lt.s32.totalorder %s1461_s2, %s1455_s12 }
  0x6c   : > { %1153 = vmatprep.subr.mxu1 %v429_v9  ;;  %1110 = vmatpush3.msra.mxu0 %v299_v8  ;;  %v419_v29 = vld [vmem:[#allocation6 + $0x88] sm:$0xff]  ;;  %v288_v30 = vld [vmem:[#allocation6] sm:$0xff]  ;;  %v563_v34 = vld [vmem:[#allocation6 + $0x178] sm:$0xff] }
  0x6d   : > { %1154 = vmatpush3.msra.mxu1 %v429_v9  ;;  %1111 = vmatprep.subr.mxu0 %v298_v10  ;;  %v418_v31 = vld [vmem:[#allocation6 + $0x80] sm:$0xff]  ;;  %v1781_v33 = vld [vmem:[%s1765_s8 + $0x8] sm:$0xff]  ;;  %v1784_v35 = vld [vmem:[%s1765_s8 + $0x10] sm:$0xff]  ;;  %p1464_p11 = por %p1463_p9, %p1462_p2 }
  0x6e   : > { %1155 = vmatprep.subr.mxu1 %v428_v11  ;;  %1112 = vmatpush3.msra.mxu0 %v298_v10  ;;  %v280_v32 = vld [vmem:[%s1765_s8] sm:$0xff]  ;;  %v562_v36 = vld [vmem:[#allocation6 + $0x170] sm:$0xff]  ;;  %v1790_v37 = vld [vmem:[%s1765_s8 + $0x18] sm:$0xff] }
  0x6f   : > { %1156 = vmatpush3.msra.mxu1 %v428_v11  ;;  %1113 = vmatprep.subr.mxu0 %v297_v12  ;;  %v561_v38 = vld [vmem:[#allocation6 + $0x168] sm:$0xff]  ;;  %v284_v39 = vld [vmem:[%s1765_s8 + $0x20] sm:$0xff]  ;;  %v559_v42 = vld [vmem:[#allocation6 + $0x158] sm:$0xff]  ;;  %p1465_p12 = pnand %p1464_p11, %p1458_p8 }
  0x70   : > { %1157 = vmatprep.subr.mxu1 %v427_v13  ;;  %1114 = vmatpush3.msra.mxu0 %v297_v12  ;;  %v560_v40 = vld [vmem:[#allocation6 + $0x160] sm:$0xff]  ;;  %v285_v41 = vld [vmem:[%s1765_s8 + $0x28] sm:$0xff]  ;;  %v286_v43 = vld [vmem:[%s1765_s8 + $0x30] sm:$0xff] }
  0x71   : > { %1158 = vmatpush3.msra.mxu1 %v427_v13  ;;  %1115 = vmatprep.subr.mxu0 %v296_v14  ;;  %v558_v44 = vld [vmem:[#allocation6 + $0x150] sm:$0xff]  ;;  %v287_v45 = vld [vmem:[%s1765_s8 + $0x38] sm:$0xff]  ;;  %v557_v46 = vld [vmem:[#allocation6 + $0x148] sm:$0xff] }
  0x72   : > { %1159 = vmatprep.subr.mxu1 %v426_v15  ;;  %1116 = vmatpush3.msra.mxu0 %v296_v14  ;;  %v556_v47 = vld [vmem:[#allocation6 + $0x140] sm:$0xff]  ;;  %v555_v48 = vld [vmem:[#allocation6 + $0x138] sm:$0xff]  ;;  %v554_v49 = vld [vmem:[#allocation6 + $0x130] sm:$0xff] }
  0x73   : > { %1160 = vmatpush3.msra.mxu1 %v426_v15  ;;  %1117 = vmatprep.subr.mxu0 %v295_v16  ;;  %v553_v50 = vld [vmem:[#allocation6 + $0x128] sm:$0xff]  ;;  %v552_v51 = vld [vmem:[#allocation6 + $0x120] sm:$0xff]  ;;  %v551_v52 = vld [vmem:[#allocation6 + $0x118] sm:$0xff] }
  0x74   : > { %1161 = vmatprep.subr.mxu1 %v425_v17  ;;  %1118 = vmatpush3.msra.mxu0 %v295_v16  ;;  %v550_v53 = vld [vmem:[#allocation6 + $0x110] sm:$0xff]  ;;  %v549_v54 = vld [vmem:[#allocation6 + $0x108] sm:$0xff]  ;;  %v548_v55 = vld [vmem:[#allocation6 + $0x100] sm:$0xff] }
  0x75   : > { %1162 = vmatpush3.msra.mxu1 %v425_v17  ;;  %1119 = vmatprep.subr.mxu0 %v294_v18  ;;  %v678_v57 = vld [vmem:[#allocation8 + $0x8] sm:$0xff] }
  0x76   : > { %1163 = vmatprep.subr.mxu1 %v424_v19  ;;  %1120 = vmatpush3.msra.mxu0 %v294_v18  ;;  %v677_v18 = vld [vmem:[#allocation8] sm:$0xff] }
  0x77   : > { %1164 = vmatpush3.msra.mxu1 %v424_v19  ;;  %1121 = vmatprep.subr.mxu0 %v293_v20  ;;  %v680_v19 = vld [vmem:[#allocation8 + $0x18] sm:$0xff] }
  0x78   : > { %1165 = vmatprep.subr.mxu1 %v423_v21  ;;  %1122 = vmatpush3.msra.mxu0 %v293_v20  ;;  %v679_v20 = vld [vmem:[#allocation8 + $0x10] sm:$0xff] }
  0x79   : > { %1166 = vmatpush3.msra.mxu1 %v423_v21  ;;  %1123 = vmatprep.subr.mxu0 %v292_v22  ;;  %v682_v21 = vld [vmem:[#allocation8 + $0x28] sm:$0xff] }
  0x7a   : > { %1167 = vmatprep.subr.mxu1 %v422_v23  ;;  %1124 = vmatpush3.msra.mxu0 %v292_v22  ;;  %v681_v22 = vld [vmem:[#allocation8 + $0x20] sm:$0xff] }
  0x7b   : > { %1168 = vmatpush3.msra.mxu1 %v422_v23  ;;  %1125 = vmatprep.subr.mxu0 %v291_v24  ;;  %v684_v23 = vld [vmem:[#allocation8 + $0x38] sm:$0xff] }
  0x7c   : > { %1169 = vmatprep.subr.mxu1 %v421_v25  ;;  %1126 = vmatpush3.msra.mxu0 %v291_v24  ;;  %v683_v24 = vld [vmem:[#allocation8 + $0x30] sm:$0xff] }
  0x7d   : > { %1170 = vmatpush3.msra.mxu1 %v421_v25  ;;  %1127 = vmatprep.subr.mxu0 %v290_v26  ;;  %v686_v25 = vld [vmem:[#allocation8 + $0x48] sm:$0xff] }
  0x7e   : > { %1171 = vmatprep.subr.mxu1 %v420_v27  ;;  %1128 = vmatpush3.msra.mxu0 %v290_v26  ;;  %v685_v26 = vld [vmem:[#allocation8 + $0x40] sm:$0xff] }
  0x7f   : > { %1172 = vmatpush3.msra.mxu1 %v420_v27  ;;  %1129 = vmatprep.subr.mxu0 %v289_v28  ;;  %v688_v27 = vld [vmem:[#allocation8 + $0x58] sm:$0xff] }
  0x80   : > { %1173 = vmatprep.subr.mxu1 %v419_v29  ;;  %1130 = vmatpush3.msra.mxu0 %v289_v28  ;;  %v687_v28 = vld [vmem:[#allocation8 + $0x50] sm:$0xff] }
  0x81   : > { %1174 = vmatpush3.msra.mxu1 %v419_v29  ;;  %1131 = vmatprep.subr.mxu0 %v288_v30  ;;  %v690_v29 = vld [vmem:[#allocation8 + $0x68] sm:$0xff] }
  0x82   : > { %1175 = vmatprep.subr.mxu1 %v418_v31  ;;  %1132 = vmatpush3.msra.mxu0 %v288_v30  ;;  %v689_v30 = vld [vmem:[#allocation8 + $0x60] sm:$0xff] }
  0x83   : > { %1133 = vmatprep.mubr.f32.mxu0 %v280_v32  ;;  %1176 = vmatpush3.msra.mxu1 %v418_v31  ;;  %v692_v31 = vld [vmem:[#allocation8 + $0x78] sm:$0xff] }
  0x84   : > { %1177 = vmatprep.mubr.f32.mxu1 %v280_v32  ;;  %1134 = vmatmul.mubr.f32.vlgmr.msra.gmra.mxu0 %v1781_v33 }
  0x85   : > { %1178 = vmatmul.mubr.f32.vlgmr.msra.gmra.mxu1 %v1781_v33  ;;  %1189 = vmatprep.subr.mxu0 %v563_v34 }
  0x86   : > { %1180 = vmatprep.mubr.f32.mxu1 %v1784_v35  ;;  %1190 = vmatpush3.msra.mxu0 %v563_v34 }
  0x87   : > { %1136 = vmatprep.mubr.f32.mxu0 %v1784_v35  ;;  %1191 = vmatprep.subr.mxu0 %v562_v36 }
  0x88   : > { %1192 = vmatpush3.msra.mxu0 %v562_v36  ;;  %750 = vmatprep.subr.mxu1 %v1569_v56 }
  0x89   : > { %1181 = vmatmul.mubr.f32.gmra.mxu1 %v1790_v37  ;;  %1193 = vmatprep.subr.mxu0 %v561_v38 }
  0x8a   : > { %1183 = vmatprep.mubr.f32.mxu1 %v284_v39  ;;  %1194 = vmatpush3.msra.mxu0 %v561_v38 }
  0x8b   : > { %1195 = vmatprep.subr.mxu0 %v560_v40  ;;  %1137 = vmatmul.mubr.f32.gmra.mxu0 %v1790_v37 }
  0x8c   : > { %1196 = vmatpush3.msra.mxu0 %v560_v40  ;;  %1139 = vmatprep.mubr.f32.mxu0 %v284_v39 }
  0x8d   : > { %1184 = vmatmul.mubr.f32.gmra.mxu1 %v285_v41  ;;  %1197 = vmatprep.subr.mxu0 %v559_v42 }
  0x8e   : > { %1186 = vmatprep.mubr.f32.mxu1 %v286_v43  ;;  %1198 = vmatpush3.msra.mxu0 %v559_v42 }
  0x8f   : > { %1199 = vmatprep.subr.mxu0 %v558_v44  ;;  %1140 = vmatmul.mubr.f32.gmra.mxu0 %v285_v41 }
  0x90   : > { %1200 = vmatpush3.msra.mxu0 %v558_v44  ;;  %1142 = vmatprep.mubr.f32.mxu0 %v286_v43 }
  0x91   : > { %1187 = vmatmul.mubr.f32.gmra.mxu1 %v287_v45  ;;  %1201 = vmatprep.subr.mxu0 %v557_v46 }
  0x92   : > { %1202 = vmatpush3.msra.mxu0 %v557_v46  ;;  %1015 = vmatprep.mubr.msk.f32.mxu1 %vm725_vm0, %v678_v57  ;;  %v723_v57 = vld [vmem:[#allocation9 + $0x30] sm:$0xff] }
  0x93   : > { %1203 = vmatprep.subr.mxu0 %v556_v47  ;;  %1143 = vmatmul.mubr.f32.gmra.mxu0 %v287_v45 }
  0x94   : > { %1204 = vmatpush3.msra.mxu0 %v556_v47  ;;  %1221 = vmatprep.mubr.f32.mxu0 %v280_v32  ;;  %v691_v32 = vld [vmem:[#allocation8 + $0x70] sm:$0xff] }
  0x95   : > { %1205 = vmatprep.subr.mxu0 %v555_v48 }
  0x96   : > { %1206 = vmatpush3.msra.mxu0 %v555_v48 }
  0x97   : > { %1207 = vmatprep.subr.mxu0 %v554_v49 }
  0x98   : > { %1208 = vmatpush3.msra.mxu0 %v554_v49  ;;  %v721_v49 = vld [vmem:[#allocation9 + $0x20] sm:$0xff] }
  0x99   : > { %1209 = vmatprep.subr.mxu0 %v553_v50 }
  0x9a   : > { %1210 = vmatpush3.msra.mxu0 %v553_v50 }
  0x9b   : > { %1211 = vmatprep.subr.mxu0 %v552_v51 }
  0x9c   : > { %1212 = vmatpush3.msra.mxu0 %v552_v51 }
  0x9d   : > { %1213 = vmatprep.subr.mxu0 %v551_v52 }
  0x9e   : > { %1214 = vmatpush3.msra.mxu0 %v551_v52 }
  0x9f   : > { %1215 = vmatprep.subr.mxu0 %v550_v53 }
  0xa0   : > { %1216 = vmatpush3.msra.mxu0 %v550_v53  ;;  %v722_v53 = vld [vmem:[#allocation9 + $0x28] sm:$0xff] }
  0xa1   : > { %1217 = vmatprep.subr.mxu0 %v549_v54 }
  0xa2   : > { %1218 = vmatpush3.msra.mxu0 %v549_v54 }
  0xa3   : > { %1219 = vmatprep.subr.mxu0 %v548_v55 }
  0xa4   : > { %1220 = vmatpush3.msra.mxu0 %v548_v55 }
  0xa5   : > { %1222 = vmatmul.mubr.f32.vlgmr.msra.gmra.mxu0 %v1781_v33  ;;  %v717_v33 = vld [vmem:[#allocation9] sm:$0xff] }
  0xa6   : > { %1224 = vmatprep.mubr.f32.mxu0 %v1784_v35 }
  0xa9   : > { %1225 = vmatmul.mubr.f32.gmra.mxu0 %v1790_v37  ;;  %v718_v37 = vld [vmem:[#allocation9 + $0x8] sm:$0xff] }
  0xaa   : > { %1227 = vmatprep.mubr.f32.mxu0 %v284_v39 }
  0xad   : > { %1228 = vmatmul.mubr.f32.gmra.mxu0 %v285_v41  ;;  %v719_v41 = vld [vmem:[#allocation9 + $0x10] sm:$0xff] }
  0xae   : > { %1230 = vmatprep.mubr.f32.mxu0 %v286_v43 }
  0xb1   : > { %1231 = vmatmul.mubr.f32.gmra.mxu0 %v287_v45  ;;  %v720_v45 = vld [vmem:[#allocation9 + $0x18] sm:$0xff] }
 0x144   : > { %v1135_v60 = vpop.f32.mrf.mxu0 }
 0x145   : > { %v1179_v58 = vpop.f32.mrf.mxu1 }
 0x146   : > { %v370_v63 = vpop.f32.mrf.mxu0 }
 0x147   : > { %v500_v59 = vpop.f32.mrf.mxu1 }
 0x149   : > { %v1182_v61 = vpop.f32.mrf.mxu1 }
 0x14b   : > { %v510_v62 = vpop.f32.mrf.mxu1  ;;  %v1138_v2 = vpop.f32.mrf.mxu0 }
 0x14d   : > { %v1185_v0 = vpop.f32.mrf.mxu1  ;;  %v380_v5 = vpop.f32.mrf.mxu0 }
 0x14f   : > { %v520_v1 = vpop.f32.mrf.mxu1  ;;  %v1141_v6 = vpop.f32.mrf.mxu0 }
 0x151   : > { %v1188_v3 = vpop.f32.mrf.mxu1  ;;  %v390_v7 = vpop.f32.mrf.mxu0 }
 0x152   : > { %751 = vmatpush1.msra.mxu1 %v1188_v3 }
 0x153   : > { %v530_v4 = vpop.f32.mrf.mxu1  ;;  %752 = vmatprep.subr.mxu1 %v1569_v56  ;;  %v1144_v8 = vpop.f32.mrf.mxu0 }
 0x154   : > { %753 = vmatpush1.msra.mxu1 %v530_v4 }
 0x155   : > { %754 = vmatprep.subr.mxu1 %v1569_v56  ;;  %v400_v9 = vpop.f32.mrf.mxu0 }
 0x156   : > { %755 = vmatpush1.msra.mxu1 %v1185_v0 }
 0x157   : > { %756 = vmatprep.subr.mxu1 %v1569_v56 }
 0x158   : > { %757 = vmatpush1.msra.mxu1 %v520_v1 }
 0x159   : > { %758 = vmatprep.subr.mxu1 %v1569_v56 }
 0x15a   : > { %759 = vmatpush1.msra.mxu1 %v1182_v61  ;;  %v724_v61 = vld [vmem:[#allocation9 + $0x38] sm:$0xff] }
 0x15b   : > { %760 = vmatprep.subr.mxu1 %v1569_v56 }
 0x15c   : > { %761 = vmatpush1.msra.mxu1 %v510_v62 }
 0x15d   : > { %762 = vmatprep.subr.mxu1 %v1569_v56 }
 0x15e   : > { %763 = vmatpush1.msra.mxu1 %v1179_v58 }
 0x15f   : > { %764 = vmatprep.subr.mxu1 %v1569_v56 }
 0x160   : > { %765 = vmatpush1.msra.mxu1 %v500_v59 }
 0x161   : > { %766 = vmatprep.subr.mxu1 %v1569_v56 }
 0x162   : > { %767 = vmatpush1.msra.mxu1 %v1144_v8 }
 0x163   : > { %768 = vmatprep.subr.mxu1 %v1569_v56 }
 0x164   : > { %769 = vmatpush1.msra.mxu1 %v400_v9 }
 0x165   : > { %770 = vmatprep.subr.mxu1 %v1569_v56  ;;  %v1223_v10 = vpop.f32.mrf.mxu0 }
 0x166   : > { %771 = vmatpush1.msra.mxu1 %v1141_v6 }
 0x167   : > { %772 = vmatprep.subr.mxu1 %v1569_v56  ;;  %v630_v11 = vpop.f32.mrf.mxu0 }
 0x168   : > { %773 = vmatpush1.msra.mxu1 %v390_v7 }
 0x169   : > { %774 = vmatprep.subr.mxu1 %v1569_v56  ;;  %v1226_v12 = vpop.f32.mrf.mxu0 }
 0x16a   : > { %775 = vmatpush1.msra.mxu1 %v1138_v2 }
 0x16b   : > { %776 = vmatprep.subr.mxu1 %v1569_v56  ;;  %v640_v13 = vpop.f32.mrf.mxu0 }
 0x16c   : > { %777 = vmatpush1.msra.mxu1 %v380_v5 }
 0x16d   : > { %778 = vmatprep.subr.mxu1 %v1569_v56  ;;  %v1229_v14 = vpop.f32.mrf.mxu0 }
 0x16e   : > { %779 = vmatpush1.msra.mxu1 %v1135_v60 }
 0x16f   : > { %780 = vmatprep.subr.mxu1 %v1569_v56  ;;  %v650_v15 = vpop.f32.mrf.mxu0 }
 0x170   : > { %781 = vmatpush1.msra.mxu1 %v370_v63 }
 0x171   : > { %798 = vmatprep.subr.mxu1 %v1569_v56  ;;  %v1232_v16 = vpop.f32.mrf.mxu0 }
 0x172   : > { %799 = vmatpush2.msra.mxu1 %v1232_v16 }
 0x173   : > { %v660_v17 = vpop.f32.mrf.mxu0  ;;  %800 = vmatprep.subr.mxu1 %v1569_v56 }
 0x174   : > { %801 = vmatpush2.msra.mxu1 %v660_v17 }
 0x175   : > { %802 = vmatprep.subr.mxu1 %v1569_v56 }
 0x176   : > { %803 = vmatpush2.msra.mxu1 %v1229_v14 }
 0x177   : > { %804 = vmatprep.subr.mxu1 %v1569_v56 }
 0x178   : > { %805 = vmatpush2.msra.mxu1 %v650_v15 }
 0x179   : > { %806 = vmatprep.subr.mxu1 %v1569_v56 }
 0x17a   : > { %807 = vmatpush2.msra.mxu1 %v1226_v12 }
 0x17b   : > { %808 = vmatprep.subr.mxu1 %v1569_v56 }
 0x17c   : > { %809 = vmatpush2.msra.mxu1 %v640_v13 }
 0x17d   : > { %810 = vmatprep.subr.mxu1 %v1569_v56 }
 0x17e   : > { %811 = vmatpush2.msra.mxu1 %v1223_v10 }
 0x17f   : > { %812 = vmatprep.subr.mxu1 %v1569_v56 }
 0x180   : > { %813 = vmatpush2.msra.mxu1 %v630_v11 }
 0x181   : > { %815 = vmatmul.mubr.f32.vlgmr.msra.gmra.mxu1 %v677_v18 }
 0x182   : > { %1016 = vmatprep.mubr.msk.f32.mxu1 %vm725_vm0, %v680_v19 }
 0x185   : > { %820 = vmatmul.mubr.f32.gmra.mxu1 %v679_v20 }
 0x186   : > { %1017 = vmatprep.mubr.msk.f32.mxu1 %vm725_vm0, %v682_v21 }
 0x189   : > { %825 = vmatmul.mubr.f32.gmra.mxu1 %v681_v22 }
 0x18a   : > { %1018 = vmatprep.mubr.msk.f32.mxu1 %vm725_vm0, %v684_v23 }
 0x18d   : > { %830 = vmatmul.mubr.f32.gmra.mxu1 %v683_v24 }
 0x18e   : > { %1019 = vmatprep.mubr.msk.f32.mxu1 %vm725_vm0, %v686_v25 }
 0x191   : > { %835 = vmatmul.mubr.f32.gmra.mxu1 %v685_v26 }
 0x192   : > { %1020 = vmatprep.mubr.msk.f32.mxu1 %vm725_vm0, %v688_v27 }
 0x195   : > { %840 = vmatmul.mubr.f32.gmra.mxu1 %v687_v28 }
 0x196   : > { %1021 = vmatprep.mubr.msk.f32.mxu1 %vm725_vm0, %v690_v29 }
 0x199   : > { %845 = vmatmul.mubr.f32.gmra.mxu1 %v689_v30 }
 0x19a   : > { %1022 = vmatprep.mubr.msk.f32.mxu1 %vm725_vm0, %v692_v31 }
 0x19d   : > { %850 = vmatmul.mubr.f32.gmra.mxu1 %v691_v32 }
 0x241   : > { %v816_v34 = vpop.f32.mrf.mxu1 }
 0x242   : > { %v817_v35 = vadd.f32 %v816_v34, %v717_v33 }
 0x243   : > { %v818_v36 = vpop.f32.mrf.mxu1 }
 0x244   : > { %855 = vst [vmem:[%s1836_s25] sm:$0xff] %v817_v35 }
 0x245   : > { %v821_v38 = vpop.f32.mrf.mxu1 }
 0x246   : > { %v822_v39 = vadd.f32 %v821_v38, %v718_v37 }
 0x247   : > { %v823_v40 = vpop.f32.mrf.mxu1 }
 0x248   : > { %856 = vst [vmem:[%s1836_s25 + $0x8] sm:$0xff] %v822_v39 }
 0x249   : > { %v826_v42 = vpop.f32.mrf.mxu1 }
 0x24a   : > { %v827_v43 = vadd.f32 %v826_v42, %v719_v41 }
 0x24b   : > { %v828_v44 = vpop.f32.mrf.mxu1 }
 0x24c   : > { %857 = vst [vmem:[%s1836_s25 + $0x10] sm:$0xff] %v827_v43 }
 0x24d   : > { %v831_v46 = vpop.f32.mrf.mxu1 }
 0x24e   : > { %v832_v47 = vadd.f32 %v831_v46, %v720_v45 }
 0x24f   : > { %v833_v48 = vpop.f32.mrf.mxu1 }
 0x250   : > { %858 = vst [vmem:[%s1836_s25 + $0x18] sm:$0xff] %v832_v47 }
 0x251   : > { %v836_v50 = vpop.f32.mrf.mxu1 }
 0x252   : > { %v837_v51 = vadd.f32 %v836_v50, %v721_v49 }
 0x253   : > { %v838_v52 = vpop.f32.mrf.mxu1 }
 0x254   : > { %859 = vst [vmem:[%s1836_s25 + $0x20] sm:$0xff] %v837_v51 }
 0x255   : > { %v841_v54 = vpop.f32.mrf.mxu1 }
 0x256   : > { %v842_v55 = vadd.f32 %v841_v54, %v722_v53 }
 0x257   : > { %v843_v56 = vpop.f32.mrf.mxu1 }
 0x258   : > { %860 = vst [vmem:[%s1836_s25 + $0x28] sm:$0xff] %v842_v55 }
 0x259   : > { %v846_v58 = vpop.f32.mrf.mxu1 }
 0x25a   : > { %v847_v59 = vadd.f32 %v846_v58, %v723_v57 }
 0x25b   : > { %v848_v60 = vpop.f32.mrf.mxu1 }
 0x25c   : > { %861 = vst [vmem:[%s1836_s25 + $0x30] sm:$0xff] %v847_v59 }
 0x25d   : > { %v851_v62 = vpop.f32.mrf.mxu1 }
 0x25e   : > { %v852_v63 = vadd.f32 %v851_v62, %v724_v61 }
 0x25f   : > { %v853_v0 = vpop.f32.mrf.mxu1 }
 0x260   : > { %862 = vst [vmem:[%s1836_s25 + $0x38] sm:$0xff] %v852_v63 }
 0x261   : > { %1468 = shalt.err (!%p1465_p12)
}
 0x262   : > { %s1469_s7 = scalar_lea.hbm %s1853_s26, 1024  ;;  %s1473_s5 = scalar_lea.hbm %s1911_s4, 4096 }
 0x263   : > { %p1470_p13 = scmp.ne.s32.totalorder %s1853_s26, %s1469_s7  ;;  %p1474_p5 = scmp.lt.s32.totalorder %s1853_s26, %s1911_s4 }
 0x264   : > { %p1475_p7 = scmp.lt.s32.totalorder %s1473_s5, %s1469_s7 }
 0x265   : > { %p1471_p0 = pnand %p1470_p13, %p1719_p3 }
 0x266   : > { %p1476_p1 = por %p1475_p7, %p1474_p5 }
 0x267   : > { %p1472_p10 = pneg %p1471_p0 }
 0x269   : > { %p1477_p4 = pnand %p1476_p1, %p1472_p10 }
 0x26b   : > { %1480 = shalt.err (!%p1477_p4)
}
 0x26c   : > { %s1571_s25 = smov 128   ;;  %s1572_s27 = smov 8  }
 0x26d   : > { %1247 = dma.vmem_to_hbm [thread:$0]  (%p1719_p3), %s1847_s6, 1024, %s1853_s26, %s864_s24, %s1571_s25, %s1571_s25, %s1572_s27  }
 0x26e PF: > { %s1937_s29 = sld [smem:[#allocation16_spill]]  ;;  %p1274_p8 = scmp.ge.s32.totalorder %s1559_s22, 2 }
 0x270   : > { %p1264_p2 = pnand %p1274_p8, %p1657_p6 }
 0x272   : > { %p1265_p9 = pneg %p1264_p2 }
 0x274   : > { %s894_s13 = sand.u32 1, %s1937_s29  }
 0x275   : > { %s895_s18 = scalar_lea.sflag [#allocation5], %s894_s13 }
 0x276   : > { %1526 = dma.done.wait (%p1265_p9), %s895_s18, 1024  }
 0x277   : > { %1528 = vsyncadd (%p1265_p9), %s895_s18, 4294966272  ;;  %s22_s22 = sadd.s32 1, %s1559_s22   ;;  %s1939_s30 = sld [smem:[#allocation18_spill]] }
 0x278   : > { %p19_p11 = scmp.ge.s32.totalorder %s22_s22, 6   ;;  %s1940_s15 = smov %s1535_s16 }
 0x279   : > { %s1941_s16 = smov %s1539_s17  ;;  %s1942_s17 = smov %s1736_s1 }
 0x27a   : > { %s1943_s18 = smov %s1551_s20  ;;  %s1944_s19 = smov %s1555_s21 }
 0x27b   : > { %s1946_s21 = smov %s1952_s14  ;;  %21 = sbr.rel (!%p19_p11) target bundleno = 13 (0xd), region = 95 }
 0x27d   : > { %s1945_s20 = smov %s1939_s30 }
 0x280   :  { %900 = vsyncpa [#allocation4], 1 }
 0x281   :  { %902 = vsyncpa [#allocation4 + $0x1], 1 }
 0x282   :  { %903 = vsyncpa [#allocation7], 1 }
 0x283   :  { %904 = vsyncpa [#allocation10], 1 }
 0x284   :  { %905 = vsyncpa [#allocation5], 1 }
 0x285   :  { %907 = vsyncpa [#allocation5 + $0x1], 1 }

</bundles_post_ra>
